<compile_context>
chip_gen: v7x
topology: tpu7x:2x2x1
jax: 0.10.0
libtpu: 0.0.40
codegen_flags: <defaults>
</compile_context>

<pallas_src>
import jax
import jax.numpy as jnp
from jax import lax
from jax.experimental import pallas as pl
from jax.experimental.pallas import tpu as pltpu


def _round_up(a: int, b: int) -> int:
    return (a + b - 1) // b * b


_NEG_BIG = -1e30  # finite "-inf": keeps masked lanes out of the LSE without NaN


def _make_ce_label_smooth_kernel(*, num_classes: int, epsilon: float,
                                 tb: int, tk: int):
    K = int(num_classes)
    eps = float(epsilon)
    eps_over_k = eps / K
    one_minus_eps = 1.0 - eps
    k_rem = K % tk  # != 0 -> last class tile overhangs K and must be masked

    def kernel(x_ref, tgt_ref, out_ref, m_sc, s_sc, w_sc):
        # All program_id / num_programs reads happen at the kernel top level
        # (never inside pl.when bodies), then flow into the branches by value.
        k = pl.program_id(1)
        nk = pl.num_programs(1)
        is_first = k == 0
        is_last = k == nk - 1

        @pl.when(is_first)
        def _init():
            m_sc[...] = jnp.full_like(m_sc, _NEG_BIG)
            s_sc[...] = jnp.zeros_like(s_sc)
            w_sc[...] = jnp.zeros_like(w_sc)

        x = x_ref[...].astype(jnp.float32)                  # (TB, TK) f32 compute
        tgt = tgt_ref[...]                                  # (TB, 1) int32

        # (1, TK) local lane indices; broadcast against (TB, 1) operands.
        local_col = lax.broadcasted_iota(jnp.int32, (1, tk), 1)

        if k_rem != 0:
            # Boundary class tile: out-of-range lanes hold undefined data.
            col_valid = local_col < (K - k * tk)            # (1, TK) bool
            xv = jnp.where(col_valid, x, _NEG_BIG)
        else:
            col_valid = None
            xv = x

        # --- online logsumexp across class tiles ---
        tile_max = jnp.max(xv, axis=1, keepdims=True)       # (TB, 1)
        m_new = jnp.maximum(m_sc[...], tile_max)
        alpha = jnp.exp(m_sc[...] - m_new)                  # EUP
        p = jnp.exp(xv - m_new)                             # EUP
        s_sc[...] = alpha * s_sc[...] + jnp.sum(p, axis=1, keepdims=True)
        m_sc[...] = m_new

        # --- fused smoothed-target weighted sum:
        #     w_b += sum_k x[b,k] * (eps/K + (1-eps)*[k == t_b])
        is_tgt = local_col == (tgt - k * tk)                # (TB, TK) bool
        w = jnp.where(is_tgt, one_minus_eps + eps_over_k, eps_over_k)
        contrib = x * w
        if col_valid is not None:
            contrib = jnp.where(col_valid, contrib, 0.0)    # drop undefined lanes
        w_sc[...] += jnp.sum(contrib, axis=1, keepdims=True)

        # --- finalize once per batch tile ---
        @pl.when(is_last)
        def _finalize():
            lse = m_sc[...] + jnp.log(s_sc[...])            # (TB, 1)
            out_ref[...] = lse - w_sc[...]

    return kernel


def cross_entropy_label_smooth(inputs, targets, num_classes, epsilon=0.1,
                               *, tb_max: int = 512, tk_max: int = 4096):
    """inputs: (B, K) logits (any float dtype, streamed as-is); targets: (B,) ints.

    Returns the scalar f32 label-smoothed cross-entropy, matching
    (-smooth_targets * log_softmax(inputs)).mean(0).sum() from the torch module.
    """
    B, K = inputs.shape
    assert K == num_classes

    # Class tile: full extent when it fits (full-extent blocks are exempt from
    # the 128-divisibility rule => no class padding at all); otherwise a
    # lane-dense multiple of 128 with the overhanging tail masked in-kernel.
    TK = K if K <= tk_max else tk_max

    TB = min(_round_up(B, 8), tb_max)
    # Keep at least two tiles on the "parallel" batch axis when possible so
    # both v7x TensorCores get work; harmless on single-TC v5e/v6e.
    if B > 8 and pl.cdiv(B, TB) < 2:
        TB = _round_up(pl.cdiv(B, 2), 8)

    grid = (pl.cdiv(B, TB), pl.cdiv(K, TK))

    tgt2d = targets.astype(jnp.int32).reshape(B, 1)

    kernel = _make_ce_label_smooth_kernel(
        num_classes=K, epsilon=epsilon, tb=TB, tk=TK)

    per_row = pl.pallas_call(
        kernel,
        out_shape=jax.ShapeDtypeStruct((B, 1), jnp.float32),
        grid_spec=pltpu.PrefetchScalarGridSpec(
            num_scalar_prefetch=0,
            grid=grid,
            in_specs=[
                # logits: tiled over (batch, class); boundary tiles masked in-kernel
                pl.BlockSpec((TB, TK), lambda b, k: (b, k)),
                # targets: one (TB, 1) int32 block per batch tile (k-independent)
                pl.BlockSpec((TB, 1), lambda b, k: (b, 0)),
            ],
            out_specs=pl.BlockSpec((TB, 1), lambda b, k: (b, 0)),
            scratch_shapes=[pltpu.VMEM((TB, 1), jnp.float32)] * 3,
        ),
        compiler_params=pltpu.CompilerParams(
            dimension_semantics=("parallel", "arbitrary"),
            vmem_limit_bytes=32 * 1024 * 1024,  # blocks <= 8 MiB dbl-buffered; v7x-safe
        ),
    )(inputs, tgt2d)

    # Output rows are exactly (B, 1) (no padded rows), so sum / B is exact.
    return jnp.sum(per_row) / B


def _reference(inputs, targets, num_classes, epsilon=0.1):
    log_probs = jax.nn.log_softmax(inputs.astype(jnp.float32), axis=1)
    onehot = jax.nn.one_hot(targets, num_classes, dtype=jnp.float32)
    smooth = (1.0 - epsilon) * onehot + epsilon / num_classes
    return jnp.sum(jnp.mean(-smooth * log_probs, axis=0))


if __name__ == "__main__":
    key = jax.random.PRNGKey(0)
    epsilon = 0.1

    # (batch, num_classes, dtype, wrapper kwargs)
    cases = [
        (8, 16, jnp.float32, {}),                    # tiny, single tile
        (2, 16, jnp.float32, {}),                    # batch smaller than sublane tile
        (12, 1000, jnp.float32, {}),                 # unaligned K, 2 batch tiles
        (16, 300, jnp.float32, dict(tk_max=128)),    # multi class tile + masked tail
        (8, 257, jnp.bfloat16, {}),                  # bf16 pass-through, odd K
    ]
    for batch, num_classes, dtype, kw in cases:
        key, k_logits, k_labels = jax.random.split(key, 3)
        logits = jax.random.normal(k_logits, (batch, num_classes),
                                   dtype=jnp.float32).astype(dtype)
        labels = jax.random.randint(k_labels, (batch,), 0, num_classes,
                                    dtype=jnp.int32)

        loss = cross_entropy_label_smooth(logits, labels, num_classes,
                                          epsilon, **kw)
        loss = jax.block_until_ready(loss)

        ref = _reference(logits, labels, num_classes, epsilon)
        assert jnp.allclose(loss, ref, atol=2e-4, rtol=2e-4), \
            (batch, num_classes, str(dtype), float(loss), float(ref))

    print("KERNEL_OK")
</pallas_src>

<mosaic_0001>
module attributes {stable_mosaic.version = 11 : i64} {
  func.func @kernel(%arg0: i32, %arg1: i32, %arg2: memref<8x16xf32, #tpu.memory_space<vmem>>, %arg3: memref<8x1xi32, #tpu.memory_space<vmem>>, %arg4: memref<8x1xf32, #tpu.memory_space<vmem>>, %arg5: memref<8x1xf32, #tpu.memory_space<vmem>>, %arg6: memref<8x1xf32, #tpu.memory_space<vmem>>, %arg7: memref<8x1xf32, #tpu.memory_space<vmem>>) attributes {dimension_semantics = [#tpu.dimension_semantics<parallel>, #tpu.dimension_semantics<arbitrary>], iteration_bounds = array<i64: 1, 1>, scalar_prefetch = 0 : i64, scratch_operands = 3 : i64, tpu.core_type = #tpu.core_type<tc>, window_params = [{transform_indices = @transform_0, window_bounds = array<i64: 8, 16>}, {transform_indices = @transform_1, window_bounds = array<i64: 8, 1>}, {transform_indices = @transform_2, window_bounds = array<i64: 8, 1>}]} {
    %c0_i32 = arith.constant 0 : i32
    %0 = arith.cmpi eq, %arg1, %c0_i32 : i32
    %c0_i32_0 = arith.constant 0 : i32
    %1 = arith.cmpi eq, %arg1, %c0_i32_0 : i32
    %2 = arith.extui %0 : i1 to i32
    %c0_i32_1 = arith.constant 0 : i32
    %3 = arith.cmpi ne, %2, %c0_i32_1 : i32
    scf.if %3 {
      %cst_24 = arith.constant -1.000000e+30 : f32
      %41 = vector.broadcast %cst_24 : f32 to vector<8x1xf32>
      %c0_25 = arith.constant 0 : index
      %c0_26 = arith.constant 0 : index
      %42 = vector.load %arg5[%c0_25, %c0_26] : memref<8x1xf32, #tpu.memory_space<vmem>>, vector<8x1xf32>
      tpu.vector_store %arg5[%c0_25, %c0_26], %41 {strides = array<i32>} : memref<8x1xf32, #tpu.memory_space<vmem>>, vector<8x1xf32>,
      %cst_27 = arith.constant 0.000000e+00 : f32
      %43 = vector.broadcast %cst_27 : f32 to vector<8x1xf32>
      %c0_28 = arith.constant 0 : index
      %c0_29 = arith.constant 0 : index
      %44 = vector.load %arg6[%c0_28, %c0_29] : memref<8x1xf32, #tpu.memory_space<vmem>>, vector<8x1xf32>
      tpu.vector_store %arg6[%c0_28, %c0_29], %43 {strides = array<i32>} : memref<8x1xf32, #tpu.memory_space<vmem>>, vector<8x1xf32>,
      %cst_30 = arith.constant 0.000000e+00 : f32
      %45 = vector.broadcast %cst_30 : f32 to vector<8x1xf32>
      %c0_31 = arith.constant 0 : index
      %c0_32 = arith.constant 0 : index
      %46 = vector.load %arg7[%c0_31, %c0_32] : memref<8x1xf32, #tpu.memory_space<vmem>>, vector<8x1xf32>
      tpu.vector_store %arg7[%c0_31, %c0_32], %45 {strides = array<i32>} : memref<8x1xf32, #tpu.memory_space<vmem>>, vector<8x1xf32>,
    } else {
    }
    %c0 = arith.constant 0 : index
    %c0_2 = arith.constant 0 : index
    %4 = vector.load %arg2[%c0, %c0_2] : memref<8x16xf32, #tpu.memory_space<vmem>>, vector<8x16xf32>
    %c0_3 = arith.constant 0 : index
    %c0_4 = arith.constant 0 : index
    %5 = vector.load %arg3[%c0_3, %c0_4] : memref<8x1xi32, #tpu.memory_space<vmem>>, vector<8x1xi32>
    %6 = tpu.iota {dimensions = array<i32: 1>} : vector<1x16xi32>
    %cst = arith.constant dense<0xFF800000> : vector<8xf32>
    %7 = vector.multi_reduction <maximumf>, %4, %cst [1] : vector<8x16xf32> to vector<8xf32>
    %8 = vector.shape_cast %7 : vector<8xf32> to vector<8x1xf32>
    %c0_5 = arith.constant 0 : index
    %c0_6 = arith.constant 0 : index
    %9 = vector.load %arg5[%c0_5, %c0_6] : memref<8x1xf32, #tpu.memory_space<vmem>>, vector<8x1xf32>
    %10 = arith.maximumf %9, %8 : vector<8x1xf32>
    %c0_7 = arith.constant 0 : index
    %c0_8 = arith.constant 0 : index
    %11 = vector.load %arg5[%c0_7, %c0_8] : memref<8x1xf32, #tpu.memory_space<vmem>>, vector<8x1xf32>
    %12 = arith.subf %11, %10 : vector<8x1xf32>
    %13 = math.exp %12 : vector<8x1xf32>
    %14 = vector.broadcast %10 : vector<8x1xf32> to vector<8x16xf32>
    %15 = arith.subf %4, %14 : vector<8x16xf32>
    %16 = math.exp %15 : vector<8x16xf32>
    %c0_9 = arith.constant 0 : index
    %c0_10 = arith.constant 0 : index
    %17 = vector.load %arg6[%c0_9, %c0_10] : memref<8x1xf32, #tpu.memory_space<vmem>>, vector<8x1xf32>
    %18 = arith.mulf %13, %17 : vector<8x1xf32>
    %cst_11 = arith.constant dense<0.000000e+00> : vector<8xf32>
    %19 = vector.multi_reduction <add>, %16, %cst_11 [1] : vector<8x16xf32> to vector<8xf32>
    %20 = vector.shape_cast %19 : vector<8xf32> to vector<8x1xf32>
    %21 = arith.addf %18, %20 : vector<8x1xf32>
    %c0_12 = arith.constant 0 : index
    %c0_13 = arith.constant 0 : index
    %22 = vector.load %arg6[%c0_12, %c0_13] : memref<8x1xf32, #tpu.memory_space<vmem>>, vector<8x1xf32>
    tpu.vector_store %arg6[%c0_12, %c0_13], %21 {strides = array<i32>} : memref<8x1xf32, #tpu.memory_space<vmem>>, vector<8x1xf32>,
    %c0_14 = arith.constant 0 : index
    %c0_15 = arith.constant 0 : index
    %23 = vector.load %arg5[%c0_14, %c0_15] : memref<8x1xf32, #tpu.memory_space<vmem>>, vector<8x1xf32>
    tpu.vector_store %arg5[%c0_14, %c0_15], %10 {strides = array<i32>} : memref<8x1xf32, #tpu.memory_space<vmem>>, vector<8x1xf32>,
    %c16_i32 = arith.constant 16 : i32
    %24 = arith.muli %arg1, %c16_i32 : i32
    %25 = vector.broadcast %24 : i32 to vector<8x1xi32>
    %26 = arith.subi %5, %25 : vector<8x1xi32>
    %27 = vector.broadcast %6 : vector<1x16xi32> to vector<8x16xi32>
    %28 = vector.broadcast %26 : vector<8x1xi32> to vector<8x16xi32>
    %29 = arith.cmpi eq, %27, %28 : vector<8x16xi32>
    %cst_16 = arith.constant 9.062500e-01 : f32
    %cst_17 = arith.constant 6.250000e-03 : f32
    %30 = vector.broadcast %cst_16 : f32 to vector<8x16xf32>
    %31 = vector.broadcast %cst_17 : f32 to vector<8x16xf32>
    %32 = arith.select %29, %30, %31 : vector<8x16xi1>, vector<8x16xf32>
    %33 = arith.mulf %4, %32 : vector<8x16xf32>
    %c0_18 = arith.constant 0 : index
    %c0_19 = arith.constant 0 : index
    %34 = vector.load %arg7[%c0_18, %c0_19] : memref<8x1xf32, #tpu.memory_space<vmem>>, vector<8x1xf32>
    %cst_20 = arith.constant dense<0.000000e+00> : vector<8xf32>
    %35 = vector.multi_reduction <add>, %33, %cst_20 [1] : vector<8x16xf32> to vector<8xf32>
    %36 = vector.shape_cast %35 : vector<8xf32> to vector<8x1xf32>
    %37 = arith.addf %34, %36 : vector<8x1xf32>
    %c0_21 = arith.constant 0 : index
    %c0_22 = arith.constant 0 : index
    %38 = vector.load %arg7[%c0_21, %c0_22] : memref<8x1xf32, #tpu.memory_space<vmem>>, vector<8x1xf32>
    tpu.vector_store %arg7[%c0_21, %c0_22], %37 {strides = array<i32>} : memref<8x1xf32, #tpu.memory_space<vmem>>, vector<8x1xf32>,
    %39 = arith.extui %1 : i1 to i32
    %c0_i32_23 = arith.constant 0 : i32
    %40 = arith.cmpi ne, %39, %c0_i32_23 : i32
    scf.if %40 {
      %c0_24 = arith.constant 0 : index
      %c0_25 = arith.constant 0 : index
      %41 = vector.load %arg5[%c0_24, %c0_25] : memref<8x1xf32, #tpu.memory_space<vmem>>, vector<8x1xf32>
      %c0_26 = arith.constant 0 : index
      %c0_27 = arith.constant 0 : index
      %42 = vector.load %arg6[%c0_26, %c0_27] : memref<8x1xf32, #tpu.memory_space<vmem>>, vector<8x1xf32>
      %43 = math.log %42 : vector<8x1xf32>
      %44 = arith.addf %41, %43 : vector<8x1xf32>
      %c0_28 = arith.constant 0 : index
      %c0_29 = arith.constant 0 : index
      %45 = vector.load %arg7[%c0_28, %c0_29] : memref<8x1xf32, #tpu.memory_space<vmem>>, vector<8x1xf32>
      %46 = arith.subf %44, %45 : vector<8x1xf32>
      %c0_30 = arith.constant 0 : index
      %c0_31 = arith.constant 0 : index
      %47 = vector.load %arg4[%c0_30, %c0_31] : memref<8x1xf32, #tpu.memory_space<vmem>>, vector<8x1xf32>
      tpu.vector_store %arg4[%c0_30, %c0_31], %46 {strides = array<i32>} : memref<8x1xf32, #tpu.memory_space<vmem>>, vector<8x1xf32>,
    } else {
    }
    return
  }
  func.func @transform_0(%arg0: i32, %arg1: i32) -> (i32, i32) {
    %c0_i32 = arith.constant 0 : i32
    return %arg0, %arg1 : i32, i32
  }
  func.func @transform_1(%arg0: i32, %arg1: i32) -> (i32, i32) {
    %c0_i32 = arith.constant 0 : i32
    %c0_i32_0 = arith.constant 0 : i32
    return %arg0, %c0_i32 : i32, i32
  }
  func.func @transform_2(%arg0: i32, %arg1: i32) -> (i32, i32) {
    %c0_i32 = arith.constant 0 : i32
    %c0_i32_0 = arith.constant 0 : i32
    return %arg0, %c0_i32 : i32, i32
  }
}

</mosaic_0001>

<bundles_post_ra>
// kernel: tpu_custom_call.1
= control target key start
LH: loop header
LB: loop body
LE: loop exit
PB: predicated region body
PF: predicated region fallthrough
CT: control target
= control target key end

     0   :  { %vm23_vm0 = vcmask 130048   ;;  %vm15_vm1 = vcmask 7168   ;;  %v91_v1 = vmov -1e+30   ;;  %v92_v3 = vmov 0   ;;  %s129_s0 = inlined_call_operand.vmem [shape: f32[8,16], index: 0, kind: input, shape index: {}]   ;;  %s130_s1 = inlined_call_operand.vmem [shape: s32[8,1], index: 1, kind: input, shape index: {}]   ;;  %s131_s2 = inlined_call_operand.vmem [shape: f32[8,1], index: 2, kind: output, shape index: {}]  }
   0x1   :  { %v19_v0 = vld [vmem:[%s129_s0] sm:$0xff]  ;;  %16 = vst.msk [vmem:[#allocation2] sm:$0xff] %vm15_vm1, %v91_v1  ;;  %83 = vset.pattern.permute.xlu0 %v92_v3  ;;  %84 = vset.pattern.permute.xlu1 %v92_v3  ;;  %v93_v4 = vmov 0.0   ;;  %v21_v11 = vlaneseq  ;;  %v94_v16 = vmov 0.00625  }
   0x2   :  { %v24_v2 = vsel %vm23_vm0, %v19_v0, -inf  ;;  %17 = vst.msk [vmem:[#allocation3] sm:$0xff] %vm15_vm1, %v93_v4  ;;  %18 = vst.msk [vmem:[#allocation4] sm:$0xff] %vm15_vm1, %v93_v4  ;;  %v20_v5 = vld [vmem:[%s130_s1] sm:$0xff] }
   0x3   :  { %25 = vmax.xlane.f32.xlu0 %v24_v2  ;;  %53 = vperm.xlu1 %84, %v20_v5   ;;  %v22_v14 = vand.u32 127, %v21_v11 }
   0x8   :  { %v27_v6 = vld [vmem:[#allocation2] sm:$0xff] }
   0x9   :  { %v40_v24 = vld [vmem:[#allocation3] sm:$0xff]  ;;  %v58_v28 = vld [vmem:[#allocation4] sm:$0xff] }
  0x82   :  { %v54_v15 = vpop.permute.xlu1 %53 }
  0x83   :  { %vm55_vm2 = vcmp.eq.s32.totalorder %v22_v14, %v54_v15 }
  0x84   :  { %v56_v17 = vsel %vm55_vm2, 0.90625, %v94_v16 }
  0x85   :  { %v57_v18 = vmul.f32 %v56_v17, %v19_v0 }
  0x87   :  { %v59_v21 = vsel %vm23_vm0, %v57_v18, 0.0 }
  0x90   :  { %v26_v7 = vpop.xlane.xlu0 %25 }
  0x91   :  { %v28_v8 = vmax.f32 %v27_v6, %v26_v7 }
  0x93   :  { %v29_v9 = vsub.f32 %v27_v6, %v28_v8  ;;  %48 = vst.msk [vmem:[#allocation2] sm:$0xff] %vm15_vm1, %v28_v8  ;;  %34 = vperm.xlu0 %83, %v28_v8  }
  0x95   :  { %v30_v22 = vmul.f32 1.442695, %v29_v9 }
  0x9a   :  { %v67_v34 = vld [vmem:[#allocation2] sm:$0xff] }
 0x112   :  { %v35_v10 = vpop.permute.xlu0 %34 }
 0x113   :  { %v37_v12 = vsub.f32 %v19_v0, %v35_v10 }
 0x115   :  { %v38_v13 = vmul.f32 1.442695, %v37_v12 }
 0x117   :  { %85 = vpow2.f32 %v38_v13 }
 0x118   :  { %87 = vpow2.f32 %v30_v22 }
 0x121   :  { %v86_v19 = vpop.eup %85 }
 0x122   :  { %v42_v20 = vsel %vm23_vm0, %v86_v19, 0.0  ;;  %v88_v23 = vpop.eup %87 }
 0x123   :  { %43 = vadd.xlane.f32.xlu1 %v42_v20  ;;  %v41_v25 = vmul.f32 %v88_v23, %v40_v24 }
 0x127   :  { %60 = vadd.xlane.f32.xlu1 %v59_v21 }
 0x1b0   :  { %v44_v26 = vpop.xlane.xlu1 %43 }
 0x1b1   :  { %v45_v27 = vadd.f32 %v44_v26, %v41_v25 }
 0x1b3   :  { %47 = vst.msk [vmem:[#allocation3] sm:$0xff] %vm15_vm1, %v45_v27 }
 0x1b4   :  { %v61_v29 = vpop.xlane.xlu1 %60 }
 0x1b5   :  { %v62_v30 = vadd.f32 %v61_v29, %v58_v28 }
 0x1b7   :  { %63 = vst.msk [vmem:[#allocation4] sm:$0xff] %vm15_vm1, %v62_v30 }
 0x1ba   :  { %v68_v31 = vld [vmem:[#allocation3] sm:$0xff] }
 0x1bb   :  { %89 = vlog2.f32 %v68_v31 }
 0x1be   :  { %v72_v35 = vld [vmem:[#allocation4] sm:$0xff] }
 0x1c5   :  { %v90_v32 = vpop.eup %89 }
 0x1c6   :  { %v70_v33 = vmul.f32 0.6931472, %v90_v32 }
 0x1c8   :  { %v71_v36 = vadd.f32 %v70_v33, %v67_v34 }
 0x1ca   :  { %v73_v37 = vsub.f32 %v71_v36, %v72_v35 }
 0x1cc   :  { %74 = vst.msk [vmem:[%s131_s2] sm:$0xff] %vm15_vm1, %v73_v37 }

</bundles_post_ra>
